<compile_context>
chip_gen: v5e
topology: v5e:2x2
jax: 0.10.0
libtpu: 0.0.40
codegen_flags: <defaults>
</compile_context>

<pallas_src>
import functools

import jax
import jax.numpy as jnp
from jax.experimental import pallas as pl
from jax.experimental.pallas import tpu as pltpu

_LANES = 128
_SUBLANES = 8
_CHUNK = _SUBLANES * _LANES       # 1024-element alignment unit for the slab
_MAX_TILE_ROWS = 8192             # 8192 x 128 x 4B = 4 MiB per f32 input buffer


def _device_kind():
    try:
        return jax.devices()[0].device_kind.lower()
    except Exception:  # pragma: no cover - defensive default
        return ""


def _bce_f32(x, y):
    # Numerically stable BCE-with-logits (== torch.nn.BCEWithLogitsLoss):
    #   max(x, 0) - x*y + log1p(exp(-|x|))
    x = x.astype(jnp.float32)
    y = y.astype(jnp.float32)
    return jnp.maximum(x, 0.0) - x * y + jnp.log1p(jnp.exp(-jnp.abs(x)))


def _bce_sum_kernel(pred_ref, gt_ref, out_ref, *,
                    rows_valid, tile_rows, blocks_per_slice, compute_dtype):
    c = pl.program_id(0)   # slice (one per TensorCore)  -- parallel
    s = pl.program_id(1)   # step within the slice       -- arbitrary (reduction)

    @pl.when(s == 0)
    def _init():
        out_ref[...] = jnp.zeros_like(out_ref)

    # Row-granular offsets only (no flat element index), so there is no int32
    # overflow until ~2^31 * 128 elements.
    block_idx = c * blocks_per_slice + s
    row0 = block_idx * tile_rows

    @pl.when(row0 < rows_valid)          # redundant clamped blocks skip all math
    def _compute():
        x = pred_ref[...].astype(compute_dtype)
        y = gt_ref[...].astype(compute_dtype)
        # Elementwise BCE computed once; partial-sum accumulation stays f32.
        per_elem = (jnp.maximum(x, 0.0) - x * y
                    + jnp.log1p(jnp.exp(-jnp.abs(x)))).astype(jnp.float32)

        def _accumulate(vals):
            # (tile_rows, 128) -> (8, 128) partial sums: pure VPU adds; the
            # cross-lane/sublane reduce is deferred to the wrapper.
            partial = vals.reshape(tile_rows // _SUBLANES, _SUBLANES, _LANES)
            out_ref[...] = out_ref[...] + jnp.sum(partial, axis=0)

        @pl.when(row0 + tile_rows <= rows_valid)
        def _full_block():
            _accumulate(per_elem)

        @pl.when(row0 + tile_rows > rows_valid)
        def _tail_block():
            # Ragged last block: the out-of-range rows were read from
            # undefined VMEM, so discard them with a true select (NOT
            # arithmetic masking, which would propagate NaN/Inf garbage).
            row_ids = jax.lax.broadcasted_iota(
                jnp.int32, (tile_rows, _LANES), 0)
            valid = (row0 + row_ids) < rows_valid
            _accumulate(jnp.where(valid, per_elem, 0.0))


def tablenet_loss(table_pred, table_gt):
    """BCEWithLogitsLoss(table_pred, table_gt) with 'mean' reduction."""
    assert table_pred.shape == table_gt.shape
    n_valid = table_pred.size

    pred_flat = table_pred.reshape(-1)
    gt_flat = table_gt.reshape(-1)

    # Kernel consumes the largest 1024-aligned prefix; the <1024-element
    # remainder is handled wrapper-side instead of jnp.pad'ing both full
    # inputs (which would add a full extra HBM read+write pass before a
    # bandwidth-bound kernel).
    n_main = (n_valid // _CHUNK) * _CHUNK
    rem = n_valid - n_main

    if n_main == 0:
        # Degenerate tiny input (< 1024 elements): pure-jnp fallback.
        return jnp.mean(_bce_f32(pred_flat, gt_flat))

    rows = n_main // _LANES                    # multiple of 8
    pred2d = pred_flat[:n_main].reshape(rows, _LANES)
    gt2d = gt_flat[:n_main].reshape(rows, _LANES)

    kind = _device_kind()
    is_v7 = ("v7" in kind) or ("7x" in kind)
    bf16_native = is_v7 or ("v6" in kind)      # bf16 VPU/EUP (NOT v5e)
    if (pred2d.dtype == jnp.bfloat16 and gt2d.dtype == jnp.bfloat16
            and bf16_native):
        compute_dtype = jnp.bfloat16
    else:
        compute_dtype = jnp.float32

    tile_rows = min(_MAX_TILE_ROWS, rows)      # full dim when rows is small
    total_blocks = pl.cdiv(rows, tile_rows)

    # One slice per TensorCore: 2 on v7x, 1 on single-TC chips (v5e/v6e), and
    # never more slices than real blocks.
    num_cores = 2 if is_v7 else 1
    num_slices = num_cores if total_blocks >= num_cores else 1
    blocks_per_slice = pl.cdiv(total_blocks, num_slices)

    def in_index_map(c, s):
        # Clamp so redundant steps of an uneven slice re-read the last real
        # block; their contribution is skipped inside the kernel.
        return (jnp.minimum(c * blocks_per_slice + s, total_blocks - 1), 0)

    in_spec = pl.BlockSpec((tile_rows, _LANES), in_index_map)
    out_spec = pl.BlockSpec((_SUBLANES, _LANES), lambda c, s: (c, 0))

    # 2 inputs x 2 pipeline buffers x tile bytes + headroom; 32 MiB floor is
    # safe on every generation (v5e/v6e: 128 MiB physical, v7x: 64 MiB/TC).
    in_itemsize = pred2d.dtype.itemsize + gt2d.dtype.itemsize
    tile_bytes = tile_rows * _LANES * in_itemsize
    vmem_limit = int(max(32 << 20, 2 * tile_bytes + (8 << 20)))

    cost = pl.CostEstimate(
        flops=6 * n_main,
        transcendentals=2 * n_main,
        bytes_accessed=n_main * in_itemsize
        + num_slices * _SUBLANES * _LANES * 4,
    )

    partials = pl.pallas_call(
        functools.partial(
            _bce_sum_kernel,
            rows_valid=rows,
            tile_rows=tile_rows,
            blocks_per_slice=blocks_per_slice,
            compute_dtype=compute_dtype,
        ),
        out_shape=jax.ShapeDtypeStruct(
            (num_slices * _SUBLANES, _LANES), jnp.float32),
        grid_spec=pltpu.PrefetchScalarGridSpec(
            num_scalar_prefetch=0,
            grid=(num_slices, blocks_per_slice),
            in_specs=[in_spec, in_spec],
            out_specs=out_spec,
        ),
        compiler_params=pltpu.CompilerParams(
            # Axis 0 (one slice per TensorCore) shards across v7x's megacore;
            # axis 1 is the resident-accumulator reduction.
            # TODO(synk): if xprof on v7x shows no cross-TC split, switch
            # axis 0 to pltpu.CORE_PARALLEL.
            dimension_semantics=(pltpu.PARALLEL, pltpu.ARBITRARY),
            vmem_limit_bytes=vmem_limit,
        ),
        cost_estimate=cost,
    )(pred2d, gt2d)

    total = jnp.sum(partials)
    if rem:
        # <1024-element tail: tiny wrapper-side computation (reads < 8 KiB).
        total = total + jnp.sum(_bce_f32(pred_flat[n_main:], gt_flat[n_main:]))
    return total / n_valid


def _reference(table_pred, table_gt):
    return jnp.mean(_bce_f32(table_pred, table_gt))


def _check(shape, dtype, key):
    k1, k2 = jax.random.split(key)
    pred = jax.random.normal(k1, shape, dtype=jnp.float32).astype(dtype)
    gt = (jax.random.uniform(k2, shape) > 0.5).astype(dtype)
    loss = tablenet_loss(pred, gt)
    jax.block_until_ready(loss)
    ref = _reference(pred, gt)
    if dtype == jnp.bfloat16:
        atol, rtol = 2e-2, 2e-2   # bf16 elementwise path on v6e/v7x
    else:
        atol, rtol = 1e-5, 1e-4
    assert jnp.allclose(loss, ref, atol=atol, rtol=rtol), (
        shape, dtype, loss, ref)


if __name__ == "__main__":
    key = jax.random.PRNGKey(0)
    keys = jax.random.split(key, 4)
    # NCHW logits / binary ground-truth masks.
    _check((2, 4, 16, 16), jnp.float32, keys[0])    # canonical small case
    _check((2, 4, 50, 30), jnp.float32, keys[1])    # wrapper-side remainder
    _check((2, 3, 700, 333), jnp.float32, keys[2])  # multi-block + ragged
                                                    # last block + remainder
    _check((2, 4, 16, 16), jnp.bfloat16, keys[3])   # native-dtype passthrough
    print("KERNEL_OK")
</pallas_src>

<mosaic_0001>
module attributes {stable_mosaic.version = 11 : i64} {
  func.func @_bce_sum_kernel(%arg0: i32, %arg1: i32, %arg2: memref<16x128xf32, #tpu.memory_space<vmem>>, %arg3: memref<16x128xf32, #tpu.memory_space<vmem>>, %arg4: memref<8x128xf32, #tpu.memory_space<vmem>>) attributes {dimension_semantics = [#tpu.dimension_semantics<parallel>, #tpu.dimension_semantics<arbitrary>], iteration_bounds = array<i64: 1, 1>, scalar_prefetch = 0 : i64, scratch_operands = 0 : i64, tpu.core_type = #tpu.core_type<tc>, window_params = [{transform_indices = @transform_0, window_bounds = array<i64: 16, 128>}, {transform_indices = @transform_1, window_bounds = array<i64: 16, 128>}, {transform_indices = @transform_2, window_bounds = array<i64: 8, 128>}]} {
    %c0_i32 = arith.constant 0 : i32
    %0 = arith.cmpi eq, %arg1, %c0_i32 : i32
    %1 = arith.extui %0 : i1 to i32
    %c0_i32_0 = arith.constant 0 : i32
    %2 = arith.cmpi ne, %1, %c0_i32_0 : i32
    scf.if %2 {
      %cst = arith.constant 0.000000e+00 : f32
      %9 = vector.broadcast %cst : f32 to vector<8x128xf32>
      %c0 = arith.constant 0 : index
      %c0_3 = arith.constant 0 : index
      %10 = vector.load %arg4[%c0, %c0_3] : memref<8x128xf32, #tpu.memory_space<vmem>>, vector<8x128xf32>
      tpu.vector_store %arg4[%c0, %c0_3], %9 {strides = array<i32>} : memref<8x128xf32, #tpu.memory_space<vmem>>, vector<8x128xf32>,
    } else {
    }
    %c1_i32 = arith.constant 1 : i32
    %3 = arith.muli %arg0, %c1_i32 : i32
    %4 = arith.addi %3, %arg1 : i32
    %c16_i32 = arith.constant 16 : i32
    %5 = arith.muli %4, %c16_i32 : i32
    %c16_i32_1 = arith.constant 16 : i32
    %6 = arith.cmpi slt, %5, %c16_i32_1 : i32
    %7 = arith.extui %6 : i1 to i32
    %c0_i32_2 = arith.constant 0 : i32
    %8 = arith.cmpi ne, %7, %c0_i32_2 : i32
    scf.if %8 {
      %c0 = arith.constant 0 : index
      %c0_3 = arith.constant 0 : index
      %9 = vector.load %arg2[%c0, %c0_3] : memref<16x128xf32, #tpu.memory_space<vmem>>, vector<16x128xf32>
      %c0_4 = arith.constant 0 : index
      %c0_5 = arith.constant 0 : index
      %10 = vector.load %arg3[%c0_4, %c0_5] : memref<16x128xf32, #tpu.memory_space<vmem>>, vector<16x128xf32>
      %cst = arith.constant 0.000000e+00 : f32
      %11 = vector.broadcast %cst : f32 to vector<16x128xf32>
      %12 = arith.maximumf %9, %11 : vector<16x128xf32>
      %13 = arith.mulf %9, %10 : vector<16x128xf32>
      %14 = arith.subf %12, %13 : vector<16x128xf32>
      %15 = math.absf %9 : vector<16x128xf32>
      %cst_6 = arith.constant 0.000000e+00 : f32
      %16 = vector.broadcast %cst_6 : f32 to vector<16x128xf32>
      %17 = arith.subf %16, %15 : vector<16x128xf32>
      %18 = math.exp %17 : vector<16x128xf32>
      %19 = math.log1p %18 : vector<16x128xf32>
      %20 = arith.addf %14, %19 : vector<16x128xf32>
      %c16_i32_7 = arith.constant 16 : i32
      %21 = arith.addi %5, %c16_i32_7 : i32
      %c16_i32_8 = arith.constant 16 : i32
      %22 = arith.cmpi sle, %21, %c16_i32_8 : i32
      %23 = arith.extui %22 : i1 to i32
      %c0_i32_9 = arith.constant 0 : i32
      %24 = arith.cmpi ne, %23, %c0_i32_9 : i32
      scf.if %24 {
        %29 = vector.shape_cast %20 : vector<16x128xf32> to vector<2x8x128xf32>
        %c0_13 = arith.constant 0 : index
        %c0_14 = arith.constant 0 : index
        %30 = vector.load %arg4[%c0_13, %c0_14] : memref<8x128xf32, #tpu.memory_space<vmem>>, vector<8x128xf32>
        %cst_15 = arith.constant dense<0.000000e+00> : vector<8x128xf32>
        %31 = vector.multi_reduction <add>, %29, %cst_15 [0] : vector<2x8x128xf32> to vector<8x128xf32>
        %32 = arith.addf %30, %31 : vector<8x128xf32>
        %c0_16 = arith.constant 0 : index
        %c0_17 = arith.constant 0 : index
        %33 = vector.load %arg4[%c0_16, %c0_17] : memref<8x128xf32, #tpu.memory_space<vmem>>, vector<8x128xf32>
        tpu.vector_store %arg4[%c0_16, %c0_17], %32 {strides = array<i32>} : memref<8x128xf32, #tpu.memory_space<vmem>>, vector<8x128xf32>,
      } else {
      }
      %c16_i32_10 = arith.constant 16 : i32
      %25 = arith.addi %5, %c16_i32_10 : i32
      %c16_i32_11 = arith.constant 16 : i32
      %26 = arith.cmpi sgt, %25, %c16_i32_11 : i32
      %27 = arith.extui %26 : i1 to i32
      %c0_i32_12 = arith.constant 0 : i32
      %28 = arith.cmpi ne, %27, %c0_i32_12 : i32
      scf.if %28 {
        %29 = tpu.iota {dimensions = array<i32: 0>} : vector<16x128xi32>
        %30 = vector.broadcast %5 : i32 to vector<16x128xi32>
        %31 = arith.addi %30, %29 : vector<16x128xi32>
        %c16_i32_13 = arith.constant 16 : i32
        %32 = vector.broadcast %c16_i32_13 : i32 to vector<16x128xi32>
        %33 = arith.cmpi slt, %31, %32 : vector<16x128xi32>
        %cst_14 = arith.constant 0.000000e+00 : f32
        %34 = vector.broadcast %cst_14 : f32 to vector<16x128xf32>
        %35 = arith.select %33, %20, %34 : vector<16x128xi1>, vector<16x128xf32>
        %36 = vector.shape_cast %35 : vector<16x128xf32> to vector<2x8x128xf32>
        %c0_15 = arith.constant 0 : index
        %c0_16 = arith.constant 0 : index
        %37 = vector.load %arg4[%c0_15, %c0_16] : memref<8x128xf32, #tpu.memory_space<vmem>>, vector<8x128xf32>
        %cst_17 = arith.constant dense<0.000000e+00> : vector<8x128xf32>
        %38 = vector.multi_reduction <add>, %36, %cst_17 [0] : vector<2x8x128xf32> to vector<8x128xf32>
        %39 = arith.addf %37, %38 : vector<8x128xf32>
        %c0_18 = arith.constant 0 : index
        %c0_19 = arith.constant 0 : index
        %40 = vector.load %arg4[%c0_18, %c0_19] : memref<8x128xf32, #tpu.memory_space<vmem>>, vector<8x128xf32>
        tpu.vector_store %arg4[%c0_18, %c0_19], %39 {strides = array<i32>} : memref<8x128xf32, #tpu.memory_space<vmem>>, vector<8x128xf32>,
      } else {
      }
    } else {
    }
    return
  }
  func.func @transform_0(%arg0: i32, %arg1: i32) -> (i32, i32) {
    %c1_i32 = arith.constant 1 : i32
    %0 = arith.muli %arg0, %c1_i32 : i32
    %1 = arith.addi %0, %arg1 : i32
    %c0_i32 = arith.constant 0 : i32
    %2 = arith.minsi %1, %c0_i32 : i32
    %c0_i32_0 = arith.constant 0 : i32
    %c0_i32_1 = arith.constant 0 : i32
    return %2, %c0_i32_0 : i32, i32
  }
  func.func @transform_1(%arg0: i32, %arg1: i32) -> (i32, i32) {
    %c1_i32 = arith.constant 1 : i32
    %0 = arith.muli %arg0, %c1_i32 : i32
    %1 = arith.addi %0, %arg1 : i32
    %c0_i32 = arith.constant 0 : i32
    %2 = arith.minsi %1, %c0_i32 : i32
    %c0_i32_0 = arith.constant 0 : i32
    %c0_i32_1 = arith.constant 0 : i32
    return %2, %c0_i32_0 : i32, i32
  }
  func.func @transform_2(%arg0: i32, %arg1: i32) -> (i32, i32) {
    %c0_i32 = arith.constant 0 : i32
    %c0_i32_0 = arith.constant 0 : i32
    return %arg0, %c0_i32 : i32, i32
  }
}

</mosaic_0001>

<bundles_post_ra>
// kernel: tpu_custom_call.1
= control target key start
LH: loop header
LB: loop body
LE: loop exit
PB: predicated region body
PF: predicated region fallthrough
CT: control target
= control target key end

     0   :  { %7 = vsyncpa [#allocation3], 0  ;;  %s283_s0 = inlined_call_operand.hbm [shape: f32[16,128], index: 0, kind: input, shape index: {}]   ;;  %s284_s1 = inlined_call_operand.hbm [shape: f32[16,128], index: 1, kind: input, shape index: {}]   ;;  %s285_s2 = inlined_call_operand.hbm [shape: f32[8,128], index: 2, kind: output, shape index: {}]  }
   0x1   :  { %8 = vsyncpa [#allocation6], 0 }
   0x2   :  { %9 = vsyncpa [#allocation4], 0  ;;  %s20_s11 = sshll.u32 %s283_s0, 4  ;;  %s254_s12 = smov [#allocation2]   ;;  %s21_s11 = int_to_ptr.hbm [resolvable:$true] %s20_s11 }
   0x3   :  { %s22_s13 = sshll.u32 %s254_s12, 4  ;;  %s39_s16 = sshll.u32 %s284_s1, 4  ;;  %s23_s13 = int_to_ptr.vmem [resolvable:$true] %s22_s13  ;;  %s40_s16 = int_to_ptr.hbm [resolvable:$true] %s39_s16 }
   0x4   :  { %s255_s17 = smov 128   ;;  %s256_s18 = smov 8  }
   0x5   :  { %28 = dma.hbm_to_vmem [thread:$0]  %s21_s11, 256, %s23_s13, [#allocation3], %s255_s17, %s255_s17, %s256_s18  }
   0x6   :  { %s257_s19 = smov [#allocation5]  }
   0x7   :  { %s41_s20 = sshll.u32 %s257_s19, 4  ;;  %s42_s20 = int_to_ptr.vmem [resolvable:$true] %s41_s20 }
   0x8   :  { %47 = dma.hbm_to_vmem [thread:$0]  %s40_s16, 256, %s42_s20, [#allocation6], %s255_s17, %s255_s17, %s256_s18  }
   0x9   :  { %248 = dma.done.wait [#allocation3], 256  }
   0xa   :  { %249 = vsyncadd [#allocation3], 4294967040 }
   0xb   :  { %250 = dma.done.wait [#allocation6], 256  }
   0xc   :  { %251 = vsyncadd [#allocation6], 4294967040  ;;  %v75_v0 = vld [vmem:[#allocation2] sm:$0xff]  ;;  %v76_v1 = vld [vmem:[#allocation2 + $0x8] sm:$0xff]  ;;  %s258_s0 = smov [#allocation7]   ;;  %s147_s23 = sshll.u32 %s285_s2, 4  ;;  %s148_s23 = int_to_ptr.hbm [resolvable:$true] %s147_s23 }
   0xd   :  { %v85_v2 = vand.u32 2147483647, %v75_v0  ;;  %v86_v3 = vand.u32 2147483647, %v76_v1  ;;  %v77_v12 = vld [vmem:[#allocation5] sm:$0xff]  ;;  %v78_v15 = vld [vmem:[#allocation5 + $0x8] sm:$0xff] }
   0xe   :  { %v79_v17 = vmax.f32 %v75_v0, 0.0  ;;  %v81_v18 = vmul.f32 %v77_v12, %v75_v0  ;;  %v80_v21 = vmax.f32 %v76_v1, 0.0  ;;  %v82_v22 = vmul.f32 %v78_v15, %v76_v1  ;;  %s145_s1 = sshll.u32 %s258_s0, 4  ;;  %s146_s1 = int_to_ptr.vmem [resolvable:$true] %s145_s1 }
   0xf   :  { %v87_v4 = vsub.f32 0.0, %v85_v2  ;;  %v88_v5 = vsub.f32 0.0, %v86_v3 }
  0x10   :  { %v83_v26 = vsub.f32 %v79_v17, %v81_v18  ;;  %v84_v29 = vsub.f32 %v80_v21, %v82_v22 }
  0x11   :  { %v89_v6 = vmul.f32 1.442695, %v87_v4  ;;  %v91_v7 = vmul.f32 1.442695, %v88_v5 }
  0x13   :  { %168 = vpow2.f32 %v89_v6 }
  0x14   :  { %170 = vpow2.f32 %v91_v7 }
  0x19   :  { %v169_v8 = vpop.eup %168 }
  0x1a   :  { %v171_v9 = vpop.eup %170  ;;  %v93_v10 = vadd.f32 1.0, %v169_v8  ;;  %v96_v11 = vmul.f32 -0.5, %v169_v8  ;;  %v99_v19 = vand.u32 2147483647, %v169_v8 }
  0x1b   :  { %v102_v13 = vadd.f32 1.0, %v171_v9  ;;  %v105_v14 = vmul.f32 -0.5, %v171_v9  ;;  %v108_v23 = vand.u32 2147483647, %v171_v9 }
  0x1c   :  { %172 = vlog2.f32 %v93_v10  ;;  %v97_v16 = vadd.f32 1.0, %v96_v11  ;;  %vm100_vm0 = vcmp.lt.f32.partialorder %v99_v19, 0.0004427343 }
  0x1d   :  { %174 = vlog2.f32 %v102_v13  ;;  %v106_v20 = vadd.f32 1.0, %v105_v14  ;;  %vm109_vm1 = vcmp.lt.f32.partialorder %v108_v23, 0.0004427343 }
  0x1e   :  { %v98_v24 = vmul.f32 %v169_v8, %v97_v16 }
  0x1f   :  { %v107_v27 = vmul.f32 %v171_v9, %v106_v20 }
  0x22   :  { %v173_v25 = vpop.eup %172 }
  0x23   :  { %v175_v28 = vpop.eup %174  ;;  %v95_v30 = vmul.f32 0.6931472, %v173_v25 }
  0x24   :  { %v104_v31 = vmul.f32 0.6931472, %v175_v28 }
  0x25   :  { %v101_v32 = vsel %vm100_vm0, %v98_v24, %v95_v30 }
  0x26   :  { %v110_v33 = vsel %vm109_vm1, %v107_v27, %v104_v31  ;;  %v111_v34 = vadd.f32 %v101_v32, %v83_v26 }
  0x27   :  { %v112_v35 = vadd.f32 %v110_v33, %v84_v29 }
  0x29   :  { %v119_v36 = vadd.f32 %v112_v35, %v111_v34 }
  0x2b   :  { %121 = vst [vmem:[#allocation7] sm:$0xff] %v119_v36 }
  0x2c   :  { %150 = dma.vmem_to_hbm [thread:$0]  %s146_s1, 128, %s148_s23, [#allocation4]  }
  0x2d   :  { %252 = dma.done.wait [#allocation4], 128  }
  0x2e   :  { %253 = vsyncadd [#allocation4], 4294967168 }
  0x2f   :  { %155 = vsyncpa [#allocation3], 1 }
  0x30   :  { %156 = vsyncpa [#allocation6], 1 }
  0x31   :  { %157 = vsyncpa [#allocation4], 1 }

</bundles_post_ra>
